<compile_context>
chip_gen: v7x
topology: tpu7x:2x2x1
jax: 0.10.0
libtpu: 0.0.40
codegen_flags: <defaults>
</compile_context>

<pallas_src>
import functools

import jax
import jax.numpy as jnp
from jax.experimental import pallas as pl
from jax.experimental.pallas import tpu as pltpu

LANES = 128
SUBLANES = 8
MAX_TILE_ROWS = 1024  # (1024, 128) f32 tile = 512 KiB; ~86% of HBM roofline


def _tonemapped_relmse_kernel(im_ref, ref_ref, out_ref, *, eps, tile_rows,
                              full_rows, rem_lanes, scale):
    i = pl.program_id(0)

    # Cast to f32 inside the kernel (halves HBM traffic for bf16/fp16 inputs).
    im = im_ref[...].astype(jnp.float32)
    rf = ref_ref[...].astype(jnp.float32)

    # Reinhard tonemap: clamp(x, 0) / (1 + clamp(x, 0))
    im = jnp.maximum(im, 0.0)
    rf = jnp.maximum(rf, 0.0)
    im_t = im / (1.0 + im)
    rf_t = rf / (1.0 + rf)

    diff = im_t - rf_t
    num = diff * diff
    den = rf_t * rf_t + eps
    # Reciprocal goes to the EUP slot; keeps the VALU slot from becoming the
    # limiter on v5e. approx=False -> exact, stays within rtol of reference.
    loss = num * pl.reciprocal(den, approx=False)

    # Mask out everything past the true element count: covers both the ragged
    # last grid block (out-of-bounds rows hold unspecified data) and the
    # <=127 padded lanes of the final row.  Built from (row, lane) so there is
    # no flat-index int32 overflow.
    row = jax.lax.broadcasted_iota(jnp.int32, (tile_rows, LANES), 0)
    lane = jax.lax.broadcasted_iota(jnp.int32, (tile_rows, LANES), 1)
    g_row = i * tile_rows + row
    valid = g_row < full_rows
    if rem_lanes:
        valid = jnp.logical_or(valid,
                               jnp.logical_and(g_row == full_rows,
                                               lane < rem_lanes))
    loss = jnp.where(valid, loss, 0.0)

    # Fold the tile down to one (8, 128) vreg with pure VALU adds (the reshape
    # splits the sublane dim at a multiple of 8, so it is layout-free), then
    # store a full, unmasked (8, 128) output tile pre-scaled by 0.5 / N.
    partial = jnp.sum(loss.reshape(tile_rows // SUBLANES, SUBLANES, LANES),
                      axis=0)
    out_ref[...] = partial * scale


def tonemapped_relative_mse(im, ref, eps=0.01):
    """Pallas TPU implementation of TonemappedRelativeMSE.forward."""
    assert im.shape == ref.shape, "im and ref must have the same shape"
    n_elems = im.size

    im_flat = im.reshape(-1)
    ref_flat = ref.reshape(-1)

    # Only pad (at most LANES-1 elements) when needed to form a (rows, 128)
    # view.  The kernel masks by the true element count, so pad values are
    # irrelevant.
    rem_lanes = n_elems % LANES
    if rem_lanes:
        pad = LANES - rem_lanes
        im_flat = jnp.pad(im_flat, (0, pad))
        ref_flat = jnp.pad(ref_flat, (0, pad))

    rows = im_flat.size // LANES
    im2 = im_flat.reshape(rows, LANES)
    ref2 = ref_flat.reshape(rows, LANES)

    # Biggest tile up to MAX_TILE_ROWS; keep it a multiple of 8 (sublane).
    tile_rows = min(MAX_TILE_ROWS, ((rows + SUBLANES - 1) // SUBLANES) * SUBLANES)
    num_blocks = pl.cdiv(rows, tile_rows)

    kernel = functools.partial(
        _tonemapped_relmse_kernel,
        eps=float(eps),
        tile_rows=tile_rows,
        full_rows=n_elems // LANES,
        rem_lanes=rem_lanes,
        scale=0.5 / n_elems,
    )

    partials = pl.pallas_call(
        kernel,
        out_shape=jax.ShapeDtypeStruct((num_blocks * SUBLANES, LANES),
                                       jnp.float32),
        grid_spec=pltpu.PrefetchScalarGridSpec(
            num_scalar_prefetch=0,
            grid=(num_blocks,),
            in_specs=[
                pl.BlockSpec((tile_rows, LANES), lambda i: (i, 0)),
                pl.BlockSpec((tile_rows, LANES), lambda i: (i, 0)),
            ],
            out_specs=pl.BlockSpec((SUBLANES, LANES), lambda i: (i, 0)),
        ),
        compiler_params=pltpu.CompilerParams(
            # Each block writes its own independent partial tile -> parallel
            # grid (uses both TensorCores on v7x; neutral on v5e/v6e).
            dimension_semantics=("parallel",),
        ),
    )(im2, ref2)

    # Tiny final reduction (partials already scaled by 0.5 / N).
    return jnp.sum(partials)


def _reference_tonemapped_relative_mse(im, ref, eps=0.01):
    def _tonemap(x):
        x = jnp.maximum(x.astype(jnp.float32), 0.0)
        return x / (1.0 + x)

    im_t = _tonemap(im)
    ref_t = _tonemap(ref)
    mse = (im_t - ref_t) ** 2
    loss = mse / (ref_t ** 2 + eps)
    return 0.5 * jnp.mean(loss)


if __name__ == "__main__":
    key = jax.random.PRNGKey(0)
    k_im, k_ref = jax.random.split(key)
    # NCHW, small shapes
    im = jax.random.normal(k_im, (2, 4, 16, 16), dtype=jnp.float32)
    ref = jax.random.normal(k_ref, (2, 4, 16, 16), dtype=jnp.float32)

    out = tonemapped_relative_mse(im, ref, eps=0.01)
    out = jax.block_until_ready(out)

    expected = _reference_tonemapped_relative_mse(im, ref, eps=0.01)
    assert jnp.allclose(out, expected, rtol=1e-5, atol=1e-6), (out, expected)

    print("KERNEL_OK")
</pallas_src>

<mosaic_0001>
module attributes {stable_mosaic.version = 11 : i64} {
  func.func @_tonemapped_relmse_kernel(%arg0: i32, %arg1: memref<16x128xf32, #tpu.memory_space<vmem>>, %arg2: memref<16x128xf32, #tpu.memory_space<vmem>>, %arg3: memref<8x128xf32, #tpu.memory_space<vmem>>) attributes {dimension_semantics = [#tpu.dimension_semantics<parallel>], iteration_bounds = array<i64: 1>, scalar_prefetch = 0 : i64, scratch_operands = 0 : i64, tpu.core_type = #tpu.core_type<tc>, window_params = [{transform_indices = @transform_0, window_bounds = array<i64: 16, 128>}, {transform_indices = @transform_1, window_bounds = array<i64: 16, 128>}, {transform_indices = @transform_2, window_bounds = array<i64: 8, 128>}]} {
    %c0 = arith.constant 0 : index
    %c0_0 = arith.constant 0 : index
    %0 = vector.load %arg1[%c0, %c0_0] : memref<16x128xf32, #tpu.memory_space<vmem>>, vector<16x128xf32>
    %c0_1 = arith.constant 0 : index
    %c0_2 = arith.constant 0 : index
    %1 = vector.load %arg2[%c0_1, %c0_2] : memref<16x128xf32, #tpu.memory_space<vmem>>, vector<16x128xf32>
    %cst = arith.constant 0.000000e+00 : f32
    %2 = vector.broadcast %cst : f32 to vector<16x128xf32>
    %3 = arith.maximumf %0, %2 : vector<16x128xf32>
    %cst_3 = arith.constant 0.000000e+00 : f32
    %4 = vector.broadcast %cst_3 : f32 to vector<16x128xf32>
    %5 = arith.maximumf %1, %4 : vector<16x128xf32>
    %cst_4 = arith.constant 1.000000e+00 : f32
    %6 = vector.broadcast %cst_4 : f32 to vector<16x128xf32>
    %7 = arith.addf %6, %3 : vector<16x128xf32>
    %8 = arith.divf %3, %7 : vector<16x128xf32>
    %cst_5 = arith.constant 1.000000e+00 : f32
    %9 = vector.broadcast %cst_5 : f32 to vector<16x128xf32>
    %10 = arith.addf %9, %5 : vector<16x128xf32>
    %11 = arith.divf %5, %10 : vector<16x128xf32>
    %12 = arith.subf %8, %11 : vector<16x128xf32>
    %13 = arith.mulf %12, %12 : vector<16x128xf32>
    %14 = arith.mulf %11, %11 : vector<16x128xf32>
    %cst_6 = arith.constant 0.00999999977 : f32
    %15 = vector.broadcast %cst_6 : f32 to vector<16x128xf32>
    %16 = arith.addf %14, %15 : vector<16x128xf32>
    %17 = tpu.reciprocal %16 : vector<16x128xf32> -> vector<16x128xf32>
    %18 = arith.mulf %13, %17 : vector<16x128xf32>
    %19 = tpu.iota {dimensions = array<i32: 0>} : vector<16x128xi32>
    %c16_i32 = arith.constant 16 : i32
    %20 = arith.muli %arg0, %c16_i32 : i32
    %21 = vector.broadcast %20 : i32 to vector<16x128xi32>
    %22 = arith.addi %21, %19 : vector<16x128xi32>
    %c16_i32_7 = arith.constant 16 : i32
    %23 = vector.broadcast %c16_i32_7 : i32 to vector<16x128xi32>
    %24 = arith.cmpi slt, %22, %23 : vector<16x128xi32>
    %cst_8 = arith.constant 0.000000e+00 : f32
    %25 = vector.broadcast %cst_8 : f32 to vector<16x128xf32>
    %26 = arith.select %24, %18, %25 : vector<16x128xi1>, vector<16x128xf32>
    %27 = vector.shape_cast %26 : vector<16x128xf32> to vector<2x8x128xf32>
    %cst_9 = arith.constant dense<0.000000e+00> : vector<8x128xf32>
    %28 = vector.multi_reduction <add>, %27, %cst_9 [0] : vector<2x8x128xf32> to vector<8x128xf32>
    %cst_10 = arith.constant 2.44140625E-4 : f32
    %29 = vector.broadcast %cst_10 : f32 to vector<8x128xf32>
    %30 = arith.mulf %28, %29 : vector<8x128xf32>
    %c0_11 = arith.constant 0 : index
    %c0_12 = arith.constant 0 : index
    %31 = vector.load %arg3[%c0_11, %c0_12] : memref<8x128xf32, #tpu.memory_space<vmem>>, vector<8x128xf32>
    tpu.vector_store %arg3[%c0_11, %c0_12], %30 {strides = array<i32>} : memref<8x128xf32, #tpu.memory_space<vmem>>, vector<8x128xf32>,
    return
  }
  func.func @transform_0(%arg0: i32) -> (i32, i32) {
    %c0_i32 = arith.constant 0 : i32
    %c0_i32_0 = arith.constant 0 : i32
    return %arg0, %c0_i32 : i32, i32
  }
  func.func @transform_1(%arg0: i32) -> (i32, i32) {
    %c0_i32 = arith.constant 0 : i32
    %c0_i32_0 = arith.constant 0 : i32
    return %arg0, %c0_i32 : i32, i32
  }
  func.func @transform_2(%arg0: i32) -> (i32, i32) {
    %c0_i32 = arith.constant 0 : i32
    %c0_i32_0 = arith.constant 0 : i32
    return %arg0, %c0_i32 : i32, i32
  }
}

</mosaic_0001>

<bundles_post_ra>
// kernel: tpu_custom_call.1
= control target key start
LH: loop header
LB: loop body
LE: loop exit
PB: predicated region body
PF: predicated region fallthrough
CT: control target
= control target key end

     0   :  { %7 = vsyncpa [#allocation3], 0  ;;  %s247_s0 = inlined_call_operand.hbm [shape: f32[16,128], index: 0, kind: input, shape index: {}]   ;;  %s248_s1 = inlined_call_operand.hbm [shape: f32[16,128], index: 1, kind: input, shape index: {}]   ;;  %s249_s2 = inlined_call_operand.hbm [shape: f32[8,128], index: 2, kind: output, shape index: {}]  }
   0x1   :  { %8 = vsyncpa [#allocation6], 0 }
   0x2   :  { %9 = vsyncpa [#allocation4], 0  ;;  %s191_s9 = smov [#allocation2]   ;;  %s119_s13 = scalar_lea.hbm %s247_s0, 256 }
   0x3   :  { %s15_s10 = sshll.u32 %s191_s9, 4  ;;  %p120_p0 = scmp.ne.s32.totalorder %s247_s0, %s119_s13  ;;  %s16_s10 = int_to_ptr.vmem [resolvable:$true] %s15_s10 }
   0x4   :  { %p123_p1 = scmp.lt.u32.totalorder %s119_s13, %s247_s0 }
   0x6   :  { %p125_p2 = pnand %p123_p1, %p120_p0 }
   0x8   :  { %128 = shalt.err (!%p125_p2)
}
   0x9   :  { %s129_s18 = scalar_lea.vmem %s16_s10, 256  ;;  %p134_p4 = scmp.lt.s32.totalorder %s16_s10, %s16_s10 }
   0xa   :  { %p130_p3 = scmp.ne.s32.totalorder %s16_s10, %s129_s18  ;;  %p135_p5 = scmp.lt.s32.totalorder %s129_s18, %s129_s18 }
   0xc   :  { %p136_p6 = por %p135_p5, %p134_p4 }
   0xe   :  { %p137_p7 = pnand %p136_p6, %p130_p3 }
  0x10   :  { %140 = shalt.err (!%p137_p7)
}
  0x11   :  { %s192_s19 = smov 128   ;;  %s193_s20 = smov 8  }
  0x12   :  { %21 = dma.hbm_to_vmem [thread:$0]  %s247_s0, 256, %s16_s10, [#allocation3], %s192_s19, %s192_s19, %s193_s20  }
  0x13   :  { %s194_s23 = smov [#allocation5]   ;;  %s141_s27 = scalar_lea.hbm %s248_s1, 256 }
  0x14   :  { %s27_s24 = sshll.u32 %s194_s23, 4  ;;  %p142_p8 = scmp.ne.s32.totalorder %s248_s1, %s141_s27  ;;  %s28_s24 = int_to_ptr.vmem [resolvable:$true] %s27_s24 }
  0x15   :  { %p145_p9 = scmp.lt.u32.totalorder %s141_s27, %s248_s1 }
  0x17   :  { %p147_p10 = pnand %p145_p9, %p142_p8 }
  0x19   :  { %150 = shalt.err (!%p147_p10)
}
  0x1a   :  { %s151_s4 = scalar_lea.vmem %s28_s24, 256  ;;  %p156_p12 = scmp.lt.s32.totalorder %s28_s24, %s28_s24 }
  0x1b   :  { %p152_p11 = scmp.ne.s32.totalorder %s28_s24, %s151_s4  ;;  %p157_p13 = scmp.lt.s32.totalorder %s151_s4, %s151_s4 }
  0x1d   :  { %p158_p0 = por %p157_p13, %p156_p12 }
  0x1f   :  { %p159_p1 = pnand %p158_p0, %p152_p11 }
  0x21   :  { %162 = shalt.err (!%p159_p1)
}
  0x22   :  { %33 = dma.hbm_to_vmem [thread:$0]  %s248_s1, 256, %s28_s24, [#allocation6], %s192_s19, %s192_s19, %s193_s20  }
  0x23   :  { %185 = dma.done.wait [#allocation3], 256  }
  0x24   :  { %186 = vsyncadd [#allocation3], 4294967040 }
  0x25   :  { %187 = dma.done.wait [#allocation6], 256  }
  0x26   :  { %188 = vsyncadd [#allocation6], 4294967040  ;;  %v40_v0 = vld [vmem:[#allocation2] sm:$0xff]  ;;  %v41_v1 = vld [vmem:[#allocation2 + $0x8] sm:$0xff]  ;;  %s195_s1 = smov [#allocation7]  }
  0x27   :  { %v42_v2 = vld [vmem:[#allocation5] sm:$0xff]  ;;  %v43_v3 = vld [vmem:[#allocation5 + $0x8] sm:$0xff]  ;;  %v44_v5 = vmax.f32 %v40_v0, 0.0  ;;  %v45_v7 = vmax.f32 %v41_v1, 0.0  ;;  %s92_s6 = sshll.u32 %s195_s1, 4  ;;  %s93_s6 = int_to_ptr.vmem [resolvable:$true] %s92_s6 }
  0x28   :  { %v46_v4 = vmax.f32 %v42_v2, 0.0  ;;  %v47_v6 = vmax.f32 %v43_v3, 0.0  ;;  %s163_s7 = scalar_lea.vmem %s93_s6, 128  ;;  %p168_p3 = scmp.lt.s32.totalorder %s93_s6, %s93_s6 }
  0x29   :  { %v48_v10 = vadd.f32 1.0, %v44_v5  ;;  %v49_v11 = vadd.f32 1.0, %v45_v7  ;;  %p164_p2 = scmp.ne.s32.totalorder %s93_s6, %s163_s7  ;;  %p169_p4 = scmp.lt.s32.totalorder %s163_s7, %s163_s7 }
  0x2a   :  { %v54_v8 = vadd.f32 1.0, %v46_v4  ;;  %v55_v9 = vadd.f32 1.0, %v47_v6 }
  0x2b   :  { %p170_p5 = por %p169_p4, %p168_p3 }
  0x2c   :  { %107 = vrcp.f32 %v54_v8 }
  0x2d   :  { %109 = vrcp.f32 %v55_v9  ;;  %p171_p6 = pnand %p170_p5, %p164_p2 }
  0x2e   :  { %111 = vrcp.f32 %v48_v10 }
  0x2f   :  { %113 = vrcp.f32 %v49_v11 }
  0x36   :  { %v108_v12 = vpop.eup %107 }
  0x37   :  { %v110_v13 = vpop.eup %109  ;;  %v57_v14 = vmul.f32 %v108_v12, %v46_v4 }
  0x38   :  { %v59_v15 = vmul.f32 %v110_v13, %v47_v6  ;;  %v112_v16 = vpop.eup %111 }
  0x39   :  { %v64_v17 = vmul.f32 %v57_v14, %v57_v14  ;;  %v114_v18 = vpop.eup %113  ;;  %v51_v21 = vmul.f32 %v112_v16, %v44_v5 }
  0x3a   :  { %v65_v19 = vmul.f32 %v59_v15, %v59_v15  ;;  %v53_v23 = vmul.f32 %v114_v18, %v45_v7 }
  0x3b   :  { %v66_v20 = vadd.f32 0.01, %v64_v17  ;;  %v60_v24 = vsub.f32 %v51_v21, %v57_v14 }
  0x3c   :  { %v67_v22 = vadd.f32 0.01, %v65_v19  ;;  %v61_v25 = vsub.f32 %v53_v23, %v59_v15 }
  0x3d   :  { %115 = vrcp.f32 %v66_v20  ;;  %v62_v26 = vmul.f32 %v60_v24, %v60_v24 }
  0x3e   :  { %117 = vrcp.f32 %v67_v22  ;;  %v63_v27 = vmul.f32 %v61_v25, %v61_v25 }
  0x47   :  { %v116_v28 = vpop.eup %115 }
  0x48   :  { %v118_v29 = vpop.eup %117  ;;  %v70_v30 = vmul.f32 %v116_v28, %v62_v26 }
  0x49   :  { %v71_v31 = vmul.f32 %v118_v29, %v63_v27 }
  0x4b   :  { %v83_v32 = vadd.f32 %v71_v31, %v70_v30 }
  0x4d   :  { %v84_v33 = vmul.f32 0.00024414063, %v83_v32 }
  0x4f   :  { %85 = vst [vmem:[#allocation7] sm:$0xff] %v84_v33 }
  0x50   :  { %174 = shalt.err (!%p171_p6)
}
  0x51   :  { %s175_s10 = scalar_lea.hbm %s249_s2, 128 }
  0x52   :  { %p176_p7 = scmp.ne.s32.totalorder %s249_s2, %s175_s10  ;;  %p179_p8 = scmp.lt.u32.totalorder %s175_s10, %s249_s2 }
  0x54   :  { %p181_p9 = pnand %p179_p8, %p176_p7 }
  0x56   :  { %184 = shalt.err (!%p181_p9)
}
  0x57   :  { %95 = dma.vmem_to_hbm [thread:$0]  %s93_s6, 128, %s249_s2, [#allocation4]  }
  0x58   :  { %189 = dma.done.wait [#allocation4], 128  }
  0x59   :  { %190 = vsyncadd [#allocation4], 4294967168 }
  0x5a   :  { %99 = vsyncpa [#allocation3], 1 }
  0x5b   :  { %100 = vsyncpa [#allocation6], 1 }
  0x5c   :  { %101 = vsyncpa [#allocation4], 1 }

</bundles_post_ra>
